<compile_context>
chip_gen: v6e
topology: v6e:2x2x1
jax: 0.10.0
libtpu: 0.0.40
codegen_flags: <defaults>
</compile_context>

<pallas_src>
import functools

import jax
import jax.numpy as jnp
from jax.experimental import pallas as pl
from jax.experimental.pallas import tpu as pltpu

_C = 4.6851
_C2_6 = _C * _C / 6.0
_LANES = 128


def _round_up(x, m):
    return ((x + m - 1) // m) * m


def _cdiv(a, b):
    return -(-a // b)


def _num_tensorcores():
    """2 only on v7x (two TensorCores per chip); 1 on v5e/v6e/others."""
    try:
        kind = jax.devices()[0].device_kind.lower()
    except Exception:
        return 1
    return 2 if "v7" in kind else 1


def _make_tukey_kernel(rows_valid, tr, steps):
    """Elementwise Tukey biweight -> per-core partial sum in one (8,128) vreg."""

    def kernel(inv_ref, res_ref, out_ref, acc_ref):
        c = pl.program_id(0)
        i = pl.program_id(1)

        @pl.when(i == 0)
        def _():
            acc_ref[...] = jnp.zeros_like(acc_ref)

        # ~8 VALU ops / element: mul, mul, sub, max, mul, mul, sub, add.
        # (c^2/6 scaling and the mean's divide are applied once in glue.)
        t = res_ref[...] * inv_ref[0]              # res / (MAD * c)
        inner = jnp.maximum(1.0 - t * t, 0.0)      # pre-cube clamp == old clip
        val = 1.0 - inner * inner * inner          # in [0, 1]; res == 0 -> 0

        start = (c * steps + i) * tr               # intended global row offset
        n_valid = rows_valid - start               # valid rows in this block

        @pl.when(n_valid >= tr)                    # hot path: full block
        def _():
            acc_ref[...] += jnp.sum(
                val.reshape(tr // 8, 8, _LANES), axis=0)

        @pl.when(n_valid < tr)                     # ragged / OOB final block
        def _():
            row_ids = jax.lax.broadcasted_iota(jnp.int32, (tr, _LANES), 0)
            masked = jnp.where(row_ids < n_valid, val, 0.0)
            acc_ref[...] += jnp.sum(
                masked.reshape(tr // 8, 8, _LANES), axis=0)

        @pl.when(i == pl.num_programs(1) - 1)
        def _():
            out_ref[0] = acc_ref[...]

    return kernel


def _mad_from_sorted(s):
    """Lower-median of |s - lower_median(s)| from a single ascending sort.

    The k-th order statistic (k = (n-1)//2, torch lower-median) of the
    V-shaped distances |s_i - med| equals the minimum over all windows of
    k+1 consecutive sorted values containing the median of the larger
    endpoint distance.  O(N); no second sort, no |res - med| array.
    """
    n = s.shape[0]
    m = (n - 1) // 2            # lower-median index == k
    med = s[m]
    L = min(m, n - 1 - m)       # number of candidate windows - 1 (static)
    left = s[: L + 1]           # window left endpoints  s[l],     l = 0..L
    right = s[m : m + L + 1]    # window right endpoints s[l + m]
    return jnp.min(jnp.maximum(med - left, right - med))


@functools.partial(jax.jit, static_argnames=("epoch", "tile_rows"))
def tukey_loss(X, Y, epoch=0, tile_rows=1024):
    X = X.astype(jnp.float32)
    Y = Y.astype(jnp.float32)

    res = (Y - X).reshape(-1)
    n_total = res.shape[0]

    # --- MAD from ONE global sort (glue). ------------------------------------
    s = jnp.sort(res)
    mad = 1.4826 * _mad_from_sorted(s)
    if epoch < 20:               # static Python branch (epoch is a static arg)
        mad = mad * 7.0
    # Hoisted reciprocal: kernel multiplies once instead of dividing twice.
    inv_scale = (1.0 / (mad * _C)).reshape(1).astype(jnp.float32)

    # --- lane-dense 2D view of the residual ----------------------------------
    rows = _cdiv(n_total, _LANES)
    lane_pad = rows * _LANES - n_total
    if lane_pad:
        # <= 127 zeros; zeros map to val == 0 in the kernel.  Under jit this
        # fuses with the (Y - X) producer (no standalone full-array copy).
        res = jnp.pad(res, (0, lane_pad))
    r2 = res.reshape(rows, _LANES)

    n_cores = _num_tensorcores()
    tr = max(8, min(_round_up(tile_rows, 8), _round_up(rows, 8)))
    n_blocks = _cdiv(rows, tr)
    steps = _cdiv(n_blocks, n_cores)
    last_block = n_blocks - 1

    partials = pl.pallas_call(
        _make_tukey_kernel(rows, tr, steps),
        out_shape=jax.ShapeDtypeStruct((n_cores, 8, _LANES), jnp.float32),
        grid_spec=pltpu.PrefetchScalarGridSpec(
            num_scalar_prefetch=0,
            grid=(n_cores, steps),
            in_specs=[
                # runtime scalar 1/(MAD*c) through the scalar path (SMEM)
                pl.BlockSpec(memory_space=pltpu.MemorySpace.SMEM),
                # residual tiles; clamp so a trailing fully-OOB block (only
                # possible when n_cores == 2 and n_blocks is odd) re-reads the
                # last valid block — its contribution is masked to 0 in-kernel.
                pl.BlockSpec(
                    (tr, _LANES),
                    lambda c, i: (jnp.minimum(c * steps + i, last_block), 0)),
            ],
            out_specs=pl.BlockSpec((1, 8, _LANES), lambda c, i: (c, 0, 0)),
            scratch_shapes=[pltpu.VMEM((8, _LANES), jnp.float32)],
        ),
        compiler_params=pltpu.CompilerParams(
            dimension_semantics=("parallel", "arbitrary")),
    )(inv_scale, r2)

    return jnp.sum(partials) * _C2_6 / n_total


# --- pure-JAX reference mirroring the PyTorch forward (independent path) -----
def _torch_lower_median(x):
    flat = x.reshape(-1)
    n = flat.shape[0]
    return jnp.sort(flat)[(n - 1) // 2]


def _tukey_loss_ref(X, Y, epoch=0):
    X = X.astype(jnp.float32)
    Y = Y.astype(jnp.float32)
    res = Y - X
    med = _torch_lower_median(res)
    mad = 1.4826 * _torch_lower_median(jnp.abs(res - med))
    if epoch < 20:
        mad = mad * 7.0
    res_mad = res / mad
    yt = _C2_6 * (1.0 - (1.0 - (res_mad / _C) ** 2) ** 3)
    yt = jnp.clip(yt, 0.0, _C2_6)
    return jnp.mean(yt)


if __name__ == "__main__":
    key = jax.random.PRNGKey(0)
    kx, ky = jax.random.split(key)
    # Small NCHW prediction / target pair.
    X = jax.random.normal(kx, (2, 4, 16, 16), dtype=jnp.float32)
    Y = jax.random.normal(ky, (2, 4, 16, 16), dtype=jnp.float32)

    loss = tukey_loss(X, Y, epoch=0)
    loss = jax.block_until_ready(loss)

    ref = _tukey_loss_ref(X, Y, epoch=0)
    assert jnp.allclose(loss, ref, rtol=1e-4, atol=1e-5), (loss, ref)

    print("KERNEL_OK")
</pallas_src>

<mosaic_0001>
module attributes {stable_mosaic.version = 11 : i64} {
  func.func @kernel(%arg0: i32, %arg1: i32, %arg2: memref<1xf32, #tpu.memory_space<smem>>, %arg3: memref<16x128xf32, #tpu.memory_space<vmem>>, %arg4: memref<1x8x128xf32, #tpu.memory_space<vmem>>, %arg5: memref<8x128xf32, #tpu.memory_space<vmem>>) attributes {dimension_semantics = [#tpu.dimension_semantics<parallel>, #tpu.dimension_semantics<arbitrary>], iteration_bounds = array<i64: 1, 1>, scalar_prefetch = 0 : i64, scratch_operands = 1 : i64, tpu.core_type = #tpu.core_type<tc>, window_params = [{transform_indices = @transform_0, window_bounds = array<i64: 1>}, {transform_indices = @transform_1, window_bounds = array<i64: 16, 128>}, {transform_indices = @transform_2, window_bounds = array<i64: 1, 8, 128>}]} {
    %c0_i32 = arith.constant 0 : i32
    %0 = arith.cmpi eq, %arg1, %c0_i32 : i32
    %1 = arith.extui %0 : i1 to i32
    %c0_i32_0 = arith.constant 0 : i32
    %2 = arith.cmpi ne, %1, %c0_i32_0 : i32
    scf.if %2 {
      %cst_12 = arith.constant 0.000000e+00 : f32
      %29 = vector.broadcast %cst_12 : f32 to vector<8x128xf32>
      %c0_13 = arith.constant 0 : index
      %c0_14 = arith.constant 0 : index
      %30 = vector.load %arg5[%c0_13, %c0_14] : memref<8x128xf32, #tpu.memory_space<vmem>>, vector<8x128xf32>
      tpu.vector_store %arg5[%c0_13, %c0_14], %29 {strides = array<i32>} : memref<8x128xf32, #tpu.memory_space<vmem>>, vector<8x128xf32>,
    } else {
    }
    %c0 = arith.constant 0 : index
    %c0_1 = arith.constant 0 : index
    %3 = vector.load %arg3[%c0, %c0_1] : memref<16x128xf32, #tpu.memory_space<vmem>>, vector<16x128xf32>
    %c0_2 = arith.constant 0 : index
    %4 = memref.load %arg2[%c0_2] : memref<1xf32, #tpu.memory_space<smem>>
    %5 = vector.broadcast %4 : f32 to vector<16x128xf32>
    %6 = arith.mulf %3, %5 : vector<16x128xf32>
    %7 = arith.mulf %6, %6 : vector<16x128xf32>
    %cst = arith.constant 1.000000e+00 : f32
    %8 = vector.broadcast %cst : f32 to vector<16x128xf32>
    %9 = arith.subf %8, %7 : vector<16x128xf32>
    %cst_3 = arith.constant 0.000000e+00 : f32
    %10 = vector.broadcast %cst_3 : f32 to vector<16x128xf32>
    %11 = arith.maximumf %9, %10 : vector<16x128xf32>
    %12 = arith.mulf %11, %11 : vector<16x128xf32>
    %13 = arith.mulf %12, %11 : vector<16x128xf32>
    %cst_4 = arith.constant 1.000000e+00 : f32
    %14 = vector.broadcast %cst_4 : f32 to vector<16x128xf32>
    %15 = arith.subf %14, %13 : vector<16x128xf32>
    %c1_i32 = arith.constant 1 : i32
    %16 = arith.muli %arg0, %c1_i32 : i32
    %17 = arith.addi %16, %arg1 : i32
    %c16_i32 = arith.constant 16 : i32
    %18 = arith.muli %17, %c16_i32 : i32
    %c16_i32_5 = arith.constant 16 : i32
    %19 = arith.subi %c16_i32_5, %18 : i32
    %c16_i32_6 = arith.constant 16 : i32
    %20 = arith.cmpi sge, %19, %c16_i32_6 : i32
    %21 = arith.extui %20 : i1 to i32
    %c0_i32_7 = arith.constant 0 : i32
    %22 = arith.cmpi ne, %21, %c0_i32_7 : i32
    scf.if %22 {
      %c0_12 = arith.constant 0 : index
      %c0_13 = arith.constant 0 : index
      %29 = vector.load %arg5[%c0_12, %c0_13] : memref<8x128xf32, #tpu.memory_space<vmem>>, vector<8x128xf32>
      %30 = vector.shape_cast %15 : vector<16x128xf32> to vector<2x8x128xf32>
      %cst_14 = arith.constant dense<0.000000e+00> : vector<8x128xf32>
      %31 = vector.multi_reduction <add>, %30, %cst_14 [0] : vector<2x8x128xf32> to vector<8x128xf32>
      %32 = arith.addf %29, %31 : vector<8x128xf32>
      %c0_15 = arith.constant 0 : index
      %c0_16 = arith.constant 0 : index
      %33 = vector.load %arg5[%c0_15, %c0_16] : memref<8x128xf32, #tpu.memory_space<vmem>>, vector<8x128xf32>
      tpu.vector_store %arg5[%c0_15, %c0_16], %32 {strides = array<i32>} : memref<8x128xf32, #tpu.memory_space<vmem>>, vector<8x128xf32>,
    } else {
    }
    %c16_i32_8 = arith.constant 16 : i32
    %23 = arith.cmpi slt, %19, %c16_i32_8 : i32
    %24 = arith.extui %23 : i1 to i32
    %c0_i32_9 = arith.constant 0 : i32
    %25 = arith.cmpi ne, %24, %c0_i32_9 : i32
    scf.if %25 {
      %29 = tpu.iota {dimensions = array<i32: 0>} : vector<16x128xi32>
      %30 = vector.broadcast %19 : i32 to vector<16x128xi32>
      %31 = arith.cmpi slt, %29, %30 : vector<16x128xi32>
      %cst_12 = arith.constant 0.000000e+00 : f32
      %32 = vector.broadcast %cst_12 : f32 to vector<16x128xf32>
      %33 = arith.select %31, %15, %32 : vector<16x128xi1>, vector<16x128xf32>
      %c0_13 = arith.constant 0 : index
      %c0_14 = arith.constant 0 : index
      %34 = vector.load %arg5[%c0_13, %c0_14] : memref<8x128xf32, #tpu.memory_space<vmem>>, vector<8x128xf32>
      %35 = vector.shape_cast %33 : vector<16x128xf32> to vector<2x8x128xf32>
      %cst_15 = arith.constant dense<0.000000e+00> : vector<8x128xf32>
      %36 = vector.multi_reduction <add>, %35, %cst_15 [0] : vector<2x8x128xf32> to vector<8x128xf32>
      %37 = arith.addf %34, %36 : vector<8x128xf32>
      %c0_16 = arith.constant 0 : index
      %c0_17 = arith.constant 0 : index
      %38 = vector.load %arg5[%c0_16, %c0_17] : memref<8x128xf32, #tpu.memory_space<vmem>>, vector<8x128xf32>
      tpu.vector_store %arg5[%c0_16, %c0_17], %37 {strides = array<i32>} : memref<8x128xf32, #tpu.memory_space<vmem>>, vector<8x128xf32>,
    } else {
    }
    %c0_i32_10 = arith.constant 0 : i32
    %26 = arith.cmpi eq, %arg1, %c0_i32_10 : i32
    %27 = arith.extui %26 : i1 to i32
    %c0_i32_11 = arith.constant 0 : i32
    %28 = arith.cmpi ne, %27, %c0_i32_11 : i32
    scf.if %28 {
      %c0_12 = arith.constant 0 : index
      %c0_13 = arith.constant 0 : index
      %29 = vector.load %arg5[%c0_12, %c0_13] : memref<8x128xf32, #tpu.memory_space<vmem>>, vector<8x128xf32>
      %c0_14 = arith.constant 0 : index
      %c0_15 = arith.constant 0 : index
      %c0_16 = arith.constant 0 : index
      %30 = vector.load %arg4[%c0_14, %c0_15, %c0_16] : memref<1x8x128xf32, #tpu.memory_space<vmem>>, vector<1x8x128xf32>
      %31 = vector.shape_cast %30 : vector<1x8x128xf32> to vector<8x128xf32>
      %32 = vector.shape_cast %29 : vector<8x128xf32> to vector<1x8x128xf32>
      tpu.vector_store %arg4[%c0_14, %c0_15, %c0_16], %32 {strides = array<i32>} : memref<1x8x128xf32, #tpu.memory_space<vmem>>, vector<1x8x128xf32>,
    } else {
    }
    return
  }
  func.func @transform_0(%arg0: i32, %arg1: i32) -> i32 {
    %c0_i32 = arith.constant 0 : i32
    %c0_i32_0 = arith.constant 0 : i32
    return %c0_i32 : i32
  }
  func.func @transform_1(%arg0: i32, %arg1: i32) -> (i32, i32) {
    %c1_i32 = arith.constant 1 : i32
    %0 = arith.muli %arg0, %c1_i32 : i32
    %1 = arith.addi %0, %arg1 : i32
    %c0_i32 = arith.constant 0 : i32
    %2 = arith.minsi %1, %c0_i32 : i32
    %c0_i32_0 = arith.constant 0 : i32
    %c0_i32_1 = arith.constant 0 : i32
    return %2, %c0_i32_0 : i32, i32
  }
  func.func @transform_2(%arg0: i32, %arg1: i32) -> (i32, i32, i32) {
    %c0_i32 = arith.constant 0 : i32
    %c0_i32_0 = arith.constant 0 : i32
    %c0_i32_1 = arith.constant 0 : i32
    return %arg0, %c0_i32, %c0_i32_0 : i32, i32, i32
  }
}

</mosaic_0001>

<bundles_post_ra>
// kernel: sub.5
= control target key start
LH: loop header
LB: loop body
LE: loop exit
PB: predicated region body
PF: predicated region fallthrough
CT: control target
= control target key end

     0   :  { %3 = vsyncpa [#allocation1], 0  ;;  %s322_s0 = inlined_call_operand.hbm [shape: f32[2,4,16,16], index: 0, kind: input, shape index: {}]   ;;  %s323_s1 = inlined_call_operand.hbm [shape: f32[2,4,16,16], index: 1, kind: input, shape index: {}]   ;;  %s324_s2 = inlined_call_operand.vmem [shape: f32[2,4,16,16], index: 2, kind: output, shape index: {}]  }
   0x1   :  { %4 = vsyncpa [#allocation3], 0  ;;  %s249_s9 = smov [#allocation0]  }
   0x2   :  { %s8_s10 = sshll.u32 %s249_s9, 4  ;;  %s9_s10 = int_to_ptr.vmem [resolvable:$true] %s8_s10 }
   0x3   :  { %s213_s11 = scalar_lea.vmem %s9_s10, 2048  ;;  %p218_p1 = scmp.lt.s32.totalorder %s9_s10, %s9_s10 }
   0x4   :  { %p214_p0 = scmp.ne.s32.totalorder %s9_s10, %s213_s11  ;;  %p219_p2 = scmp.lt.s32.totalorder %s213_s11, %s213_s11 }
   0x6   :  { %p220_p3 = por %p219_p2, %p218_p1 }
   0x8   :  { %p221_p4 = pnand %p220_p3, %p214_p0 }
   0xa   :  { %224 = shalt.err (!%p221_p4)
}
   0xb   :  { %s250_s12 = smov 128   ;;  %s251_s13 = smov 8  }
   0xc   :  { %14 = dma.hbm_to_vmem [thread:$0]  %s322_s0, 2048, %s9_s10, [#allocation1], %s250_s12, %s250_s12, %s251_s13  }
   0xd   :  { %s252_s0 = smov [#allocation2]  }
   0xe   :  { %s18_s16 = sshll.u32 %s252_s0, 4  ;;  %s19_s16 = int_to_ptr.vmem [resolvable:$true] %s18_s16 }
   0xf   :  { %s233_s17 = scalar_lea.vmem %s19_s16, 2048  ;;  %p238_p6 = scmp.lt.s32.totalorder %s19_s16, %s19_s16 }
  0x10   :  { %p234_p5 = scmp.ne.s32.totalorder %s19_s16, %s233_s17  ;;  %p239_p7 = scmp.lt.s32.totalorder %s233_s17, %s233_s17 }
  0x12   :  { %p240_p8 = por %p239_p7, %p238_p6 }
  0x14   :  { %p241_p9 = pnand %p240_p8, %p234_p5 }
  0x16   :  { %244 = shalt.err (!%p241_p9)
}
  0x17   :  { %24 = dma.hbm_to_vmem [thread:$0]  %s323_s1, 2048, %s19_s16, [#allocation3], %s250_s12, %s250_s12, %s251_s13  }
  0x18   :  { %245 = dma.done.wait [#allocation1], 2048  }
  0x19   :  { %246 = vsyncadd [#allocation1], 4294965248 }
  0x1a   :  { %247 = dma.done.wait [#allocation3], 2048  }
  0x1b   :  { %248 = vsyncadd [#allocation3], 4294965248  ;;  %v27_v0 = vld [vmem:[#allocation0] sm:$0xff]  ;;  %v45_v5 = vld [vmem:[#allocation0 + $0x10] sm:$0xff] }
  0x1c   :  { %v28_v1 = vld [vmem:[#allocation2] sm:$0xff]  ;;  %v47_v6 = vld [vmem:[#allocation2 + $0x10] sm:$0xff]  ;;  %v105_v23 = vld [vmem:[#allocation0 + $0x8] sm:$0xff] }
  0x1d   :  { %v35_v2 = vld [vmem:[#allocation0 + $0x40] sm:$0xff]  ;;  %v31_v3 = vsub.f32 %v27_v0, %v28_v1  ;;  %v50_v8 = vsub.f32 %v45_v5, %v47_v6  ;;  %v55_v9 = vld [vmem:[#allocation0 + $0x50] sm:$0xff]  ;;  %v107_v24 = vld [vmem:[#allocation2 + $0x8] sm:$0xff] }
  0x1e   :  { %v37_v4 = vld [vmem:[#allocation2 + $0x40] sm:$0xff]  ;;  %v57_v10 = vld [vmem:[#allocation2 + $0x50] sm:$0xff]  ;;  %v110_v26 = vsub.f32 %v105_v23, %v107_v24  ;;  %v115_v27 = vld [vmem:[#allocation0 + $0x48] sm:$0xff] }
  0x1f   :  { %v40_v7 = vsub.f32 %v35_v2, %v37_v4  ;;  %v65_v11 = vld [vmem:[#allocation0 + $0x20] sm:$0xff]  ;;  %33 = vst [vmem:[%s324_s2] sm:$0xff] %v31_v3  ;;  %v60_v12 = vsub.f32 %v55_v9, %v57_v10  ;;  %187 = vst [vmem:[%s324_s2 + $0x10] sm:$0xff] %v50_v8  ;;  %v85_v18 = vld [vmem:[#allocation0 + $0x30] sm:$0xff] }
  0x20   :  { %v67_v13 = vld [vmem:[#allocation2 + $0x20] sm:$0xff]  ;;  %v87_v19 = vld [vmem:[#allocation2 + $0x30] sm:$0xff]  ;;  %v117_v28 = vld [vmem:[#allocation2 + $0x48] sm:$0xff]  ;;  %193 = vst [vmem:[%s324_s2 + $0x8] sm:$0xff] %v110_v26 }
  0x21   :  { %v75_v14 = vld [vmem:[#allocation0 + $0x60] sm:$0xff]  ;;  %186 = vst [vmem:[%s324_s2 + $0x40] sm:$0xff] %v40_v7  ;;  %v70_v16 = vsub.f32 %v65_v11, %v67_v13  ;;  %v95_v20 = vld [vmem:[#allocation0 + $0x70] sm:$0xff]  ;;  %188 = vst [vmem:[%s324_s2 + $0x50] sm:$0xff] %v60_v12  ;;  %v90_v21 = vsub.f32 %v85_v18, %v87_v19  ;;  %v120_v30 = vsub.f32 %v115_v27, %v117_v28 }
  0x22   :  { %v77_v15 = vld [vmem:[#allocation2 + $0x60] sm:$0xff]  ;;  %v97_v22 = vld [vmem:[#allocation2 + $0x70] sm:$0xff]  ;;  %v125_v29 = vld [vmem:[#allocation0 + $0x18] sm:$0xff] }
  0x23   :  { %v80_v17 = vsub.f32 %v75_v14, %v77_v15  ;;  %189 = vst [vmem:[%s324_s2 + $0x20] sm:$0xff] %v70_v16  ;;  %v100_v25 = vsub.f32 %v95_v20, %v97_v22  ;;  %191 = vst [vmem:[%s324_s2 + $0x30] sm:$0xff] %v90_v21  ;;  %v127_v31 = vld [vmem:[#allocation2 + $0x18] sm:$0xff]  ;;  %v145_v36 = vld [vmem:[#allocation0 + $0x28] sm:$0xff] }
  0x24   :  { %v135_v32 = vld [vmem:[#allocation0 + $0x58] sm:$0xff]  ;;  %v130_v34 = vsub.f32 %v125_v29, %v127_v31  ;;  %v147_v37 = vld [vmem:[#allocation2 + $0x28] sm:$0xff]  ;;  %194 = vst [vmem:[%s324_s2 + $0x48] sm:$0xff] %v120_v30 }
  0x25   :  { %190 = vst [vmem:[%s324_s2 + $0x60] sm:$0xff] %v80_v17  ;;  %v137_v33 = vld [vmem:[#allocation2 + $0x58] sm:$0xff]  ;;  %192 = vst [vmem:[%s324_s2 + $0x70] sm:$0xff] %v100_v25  ;;  %v155_v38 = vld [vmem:[#allocation0 + $0x68] sm:$0xff]  ;;  %v150_v39 = vsub.f32 %v145_v36, %v147_v37 }
  0x26   :  { %v140_v35 = vsub.f32 %v135_v32, %v137_v33  ;;  %v157_v40 = vld [vmem:[#allocation2 + $0x68] sm:$0xff]  ;;  %v165_v41 = vld [vmem:[#allocation0 + $0x38] sm:$0xff]  ;;  %195 = vst [vmem:[%s324_s2 + $0x18] sm:$0xff] %v130_v34 }
  0x27   :  { %v167_v42 = vld [vmem:[#allocation2 + $0x38] sm:$0xff]  ;;  %v160_v43 = vsub.f32 %v155_v38, %v157_v40  ;;  %197 = vst [vmem:[%s324_s2 + $0x28] sm:$0xff] %v150_v39 }
  0x28   :  { %196 = vst [vmem:[%s324_s2 + $0x58] sm:$0xff] %v140_v35  ;;  %v170_v44 = vsub.f32 %v165_v41, %v167_v42  ;;  %v175_v45 = vld [vmem:[#allocation0 + $0x78] sm:$0xff] }
  0x29   :  { %v177_v46 = vld [vmem:[#allocation2 + $0x78] sm:$0xff]  ;;  %198 = vst [vmem:[%s324_s2 + $0x68] sm:$0xff] %v160_v43 }
  0x2a   :  { %v180_v47 = vsub.f32 %v175_v45, %v177_v46  ;;  %199 = vst [vmem:[%s324_s2 + $0x38] sm:$0xff] %v170_v44 }
  0x2c   :  { %200 = vst [vmem:[%s324_s2 + $0x78] sm:$0xff] %v180_v47 }
  0x2d   :  { %184 = vsyncpa [#allocation1], 1 }
  0x2e   :  { %185 = vsyncpa [#allocation3], 1 }

// kernel: tukey_loss.1
= control target key start
LH: loop header
LB: loop body
LE: loop exit
PB: predicated region body
PF: predicated region fallthrough
CT: control target
= control target key end

     0   :  { %s136_s0 = inlined_call_operand.<no memory space> [shape: f32[1], index: 0, kind: input, shape index: {}]   ;;  %s137_s1 = inlined_call_operand.vmem [shape: f32[16,128], index: 1, kind: input, shape index: {}]   ;;  %s138_s2 = inlined_call_operand.vmem [shape: f32[1,8,128], index: 2, kind: output, shape index: {}]  }
   0x1   :  { %v49_v0 = vld [vmem:[%s137_s1] sm:$0xff]  ;;  %v50_v1 = vld [vmem:[%s137_s1 + $0x8] sm:$0xff]  ;;  %v52_v2 = vstv %s136_s0 }
   0x2   :  { %v53_v3 = vmul.f32 %v52_v2, %v49_v0  ;;  %v54_v4 = vmul.f32 %v52_v2, %v50_v1 }
   0x4   :  { %v55_v5 = vmul.f32 %v53_v3, %v53_v3  ;;  %v56_v6 = vmul.f32 %v54_v4, %v54_v4 }
   0x6   :  { %v57_v7 = vsub.f32 1.0, %v55_v5  ;;  %v58_v8 = vsub.f32 1.0, %v56_v6 }
   0x8   :  { %v59_v9 = vmax.f32 %v57_v7, 0.0  ;;  %v60_v10 = vmax.f32 %v58_v8, 0.0 }
   0xa   :  { %v61_v11 = vmul.f32 %v59_v9, %v59_v9  ;;  %v62_v12 = vmul.f32 %v60_v10, %v60_v10 }
   0xc   :  { %v63_v13 = vmul.f32 %v61_v11, %v59_v9  ;;  %v64_v14 = vmul.f32 %v62_v12, %v60_v10 }
   0xe   :  { %v65_v15 = vsub.f32 1.0, %v63_v13  ;;  %v66_v16 = vsub.f32 1.0, %v64_v14 }
  0x10   :  { %v75_v17 = vadd.f32 %v66_v16, %v65_v15 }
  0x12   :  { %98 = vst [vmem:[%s138_s2] sm:$0xff] %v75_v17 }

</bundles_post_ra>
